<compile_context>
chip_gen: v7x
topology: tpu7x:2x2x1
jax: 0.10.0
libtpu: 0.0.40
codegen_flags: <defaults>
</compile_context>

<pallas_src>
import functools

import jax
import jax.numpy as jnp
from jax import lax
from jax.experimental import pallas as pl
from jax.experimental.pallas import tpu as pltpu

LANE = 128
SUBLANE_BF16 = 16


def _round_up(n, m):
    return ((n + m - 1) // m) * m


def _pad2(a, rows, cols):
    return jnp.pad(a, ((0, rows - a.shape[0]), (0, cols - a.shape[1])))


def _pick_batch_block(batch, n_pad, f_pad, h_pad, c_pad, budget=8 << 20):
    """Largest per-step batch block whose VMEM footprint stays well under the
    scoped limit (double-buffered bf16 inputs + f32 intermediates)."""
    per_graph = (n_pad * f_pad * 2 * 2          # x block (bf16, 2 buffers)
                 + n_pad * n_pad * 2 * 2        # adj block
                 + n_pad * 4 * 2                # d block
                 + n_pad * h_pad * 4 * 3        # f32 intermediates (hw, t, h)
                 + c_pad * 4 * 2)               # output block
    return max(1, min(batch, budget // max(per_graph, 1)))


def _gcn_kernel(x_ref, adj_ref, d_ref, w1_ref, w2_ref, fcw_ref, fcb_ref,
                out_ref, *, inv_n):
    bb, n, _ = x_ref.shape
    h_dim = w1_ref.shape[1]

    x = x_ref[...]          # (bb, n, F_pad)  bf16
    adj = adj_ref[...]      # (bb, n, n)      bf16 (binary -> exact)
    d = d_ref[...]          # (bb, n, 1)      f32  (precomputed D^{-1/2})
    w1 = w1_ref[...]        # (F_pad, H_pad)  bf16
    w2 = w2_ref[...]        # (H_pad, H_pad)  bf16
    fcw = fcw_ref[...]      # (H_pad, C_pad)  bf16
    fcb = fcb_ref[...]      # (1, C_pad)      f32

    def gcn_layer(h, w):
        # relu( D^-1/2 A D^-1/2 h W ) == relu( d * (A @ ((d*h) @ W)) )
        hs = (h * d).astype(jnp.bfloat16)                       # (bb, n, F)
        # Batch-shared weight matmul on the flattened slab -> M = bb*n rows
        # through the MXU (weights shared across graphs).
        hw = jnp.dot(hs.reshape(bb * n, hs.shape[-1]), w,
                     preferred_element_type=jnp.float32)        # (bb*n, H)
        hw = hw.reshape(bb, n, h_dim).astype(jnp.bfloat16)
        # Per-graph neighbourhood aggregation.
        t = jnp.einsum('bnm,bmh->bnh', adj, hw,
                       preferred_element_type=jnp.float32)      # (bb, n, H)
        return jnp.maximum(t * d, 0.0)

    h = gcn_layer(x, w1)                                        # (bb, n, H)
    h = gcn_layer(h, w2)                                        # (bb, n, H)

    # Mean-pool over nodes as a ones-row matmul (MXU has slack here);
    # 1/N applied in f32 before the bf16 cast for the FC matmul.
    ones_row = jnp.ones((bb, 1, n), jnp.bfloat16)
    pooled = jnp.einsum('bon,bnh->boh', ones_row, h.astype(jnp.bfloat16),
                        preferred_element_type=jnp.float32) * inv_n
    logits = jnp.einsum('boh,hc->boc', pooled.astype(jnp.bfloat16), fcw,
                        preferred_element_type=jnp.float32) + fcb
    out_ref[...] = logits                                       # (bb, 1, C)


def gcn_forward(x, adj, w1, w2, fc_w, fc_b):
    B, N, f_in = x.shape
    hidden = w1.shape[1]
    n_cls = fc_w.shape[1]

    f_pad = _round_up(f_in, LANE)
    h_pad = _round_up(hidden, LANE)
    c_pad = _round_up(n_cls, LANE)
    n_pad = _round_up(N, SUBLANE_BF16)          # bf16 sublane packing

    # Degree / D^{-1/2} in f32 in the wrapper (no in-kernel reduce / rsqrt).
    deg = jnp.sum(adj.astype(jnp.float32), axis=-1, keepdims=True)   # (B,N,1)
    d = jnp.where(deg > 0.0, lax.rsqrt(jnp.maximum(deg, 1e-30)), 0.0)

    bb = _pick_batch_block(B, n_pad, f_pad, h_pad, c_pad)
    n_blk = -(-B // bb)
    b_pad = n_blk * bb

    # Lane/sublane padded, bf16 operands (zero padding is exact under relu).
    x_p = jnp.zeros((b_pad, n_pad, f_pad), jnp.bfloat16)
    x_p = x_p.at[:B, :N, :f_in].set(x.astype(jnp.bfloat16))
    adj_p = jnp.zeros((b_pad, n_pad, n_pad), jnp.bfloat16)
    adj_p = adj_p.at[:B, :N, :N].set(adj.astype(jnp.bfloat16))
    d_p = jnp.zeros((b_pad, n_pad, 1), jnp.float32)
    d_p = d_p.at[:B, :N, :].set(d)

    w1_p = _pad2(w1, f_pad, h_pad).astype(jnp.bfloat16)
    w2_p = _pad2(w2, h_pad, h_pad).astype(jnp.bfloat16)
    fcw_p = _pad2(fc_w, h_pad, c_pad).astype(jnp.bfloat16)
    fcb_p = jnp.pad(fc_b.reshape(1, n_cls).astype(jnp.float32),
                    ((0, 0), (0, c_pad - n_cls)))

    flops = 2 * B * (N * N * f_in + N * f_in * hidden
                     + N * N * hidden + N * hidden * hidden
                     + N * hidden + hidden * n_cls)
    bytes_accessed = (x_p.size * 2 + adj_p.size * 2 + d_p.size * 4
                      + w1_p.size * 2 + w2_p.size * 2 + fcw_p.size * 2
                      + fcb_p.size * 4 + b_pad * c_pad * 4)

    out = pl.pallas_call(
        functools.partial(_gcn_kernel, inv_n=1.0 / N),
        out_shape=jax.ShapeDtypeStruct((b_pad, 1, c_pad), jnp.float32),
        grid=(n_blk,),
        in_specs=[
            pl.BlockSpec((bb, n_pad, f_pad), lambda b: (b, 0, 0)),
            pl.BlockSpec((bb, n_pad, n_pad), lambda b: (b, 0, 0)),
            pl.BlockSpec((bb, n_pad, 1), lambda b: (b, 0, 0)),
            pl.BlockSpec((f_pad, h_pad), lambda b: (0, 0)),
            pl.BlockSpec((h_pad, h_pad), lambda b: (0, 0)),
            pl.BlockSpec((h_pad, c_pad), lambda b: (0, 0)),
            pl.BlockSpec((1, c_pad), lambda b: (0, 0)),
        ],
        out_specs=pl.BlockSpec((bb, 1, c_pad), lambda b: (b, 0, 0)),
        compiler_params=pltpu.CompilerParams(
            dimension_semantics=("parallel",),
            vmem_limit_bytes=32 * 1024 * 1024),
        cost_estimate=pl.CostEstimate(flops=flops, transcendentals=0,
                                      bytes_accessed=bytes_accessed),
    )(x_p, adj_p, d_p, w1_p, w2_p, fcw_p, fcb_p)
    return out[:B, 0, :n_cls]


if __name__ == "__main__":
    B, N, F_IN, HIDDEN, C = 2, 8, 16, 32, 4

    key = jax.random.PRNGKey(0)
    k_x, k_adj, k_w1, k_w2, k_fcw, k_fcb = jax.random.split(key, 6)

    # Node features
    x = jax.random.normal(k_x, (B, N, F_IN), jnp.float32)

    # Random symmetric binary adjacency with self-loops
    a = (jax.random.uniform(k_adj, (B, N, N)) > 0.5).astype(jnp.float32)
    adj = jnp.clip(a + jnp.transpose(a, (0, 2, 1)) + jnp.eye(N)[None], 0.0, 1.0)

    def xavier_uniform(k, shape):
        limit = jnp.sqrt(6.0 / (shape[0] + shape[1]))
        return jax.random.uniform(k, shape, jnp.float32, -limit, limit)

    w1 = xavier_uniform(k_w1, (F_IN, HIDDEN))
    w2 = xavier_uniform(k_w2, (HIDDEN, HIDDEN))
    lim = 1.0 / jnp.sqrt(HIDDEN)
    fc_w = jax.random.uniform(k_fcw, (HIDDEN, C), jnp.float32, -lim, lim)
    fc_b = jax.random.uniform(k_fcb, (C,), jnp.float32, -lim, lim)

    out = gcn_forward(x, adj, w1, w2, fc_w, fc_b)
    jax.block_until_ready(out)

    # --- reference 1: mirrors the kernel math (same bf16 casts) ---
    def ref_mirror(x, adj):
        deg = adj.sum(-1, keepdims=True)
        d = jnp.where(deg > 0, lax.rsqrt(jnp.maximum(deg, 1e-30)), 0.0)
        adj_bf = adj.astype(jnp.bfloat16)

        def layer(h, w):
            hs = (h * d).astype(jnp.bfloat16)
            hw = jnp.einsum('bnf,fh->bnh', hs, w.astype(jnp.bfloat16),
                            preferred_element_type=jnp.float32
                            ).astype(jnp.bfloat16)
            t = jnp.einsum('bnm,bmh->bnh', adj_bf, hw,
                           preferred_element_type=jnp.float32)
            return jnp.maximum(t * d, 0.0)

        h = layer(x.astype(jnp.bfloat16), w1)
        h = layer(h, w2)
        pooled = jnp.sum(h.astype(jnp.bfloat16).astype(jnp.float32),
                         axis=1) * (1.0 / N)
        return (jnp.dot(pooled.astype(jnp.bfloat16),
                        fc_w.astype(jnp.bfloat16),
                        preferred_element_type=jnp.float32) + fc_b[None, :])

    # --- reference 2: pure-f32 math of the PyTorch module ---
    def ref_f32(x, adj):
        deg = adj.sum(-1)
        dinv = jnp.where(deg > 0, deg ** -0.5, 0.0)
        na = adj * dinv[:, :, None] * dinv[:, None, :]
        h = jax.nn.relu(jnp.einsum('bnm,bmf,fh->bnh', na, x, w1))
        h = jax.nn.relu(jnp.einsum('bnm,bmh,hk->bnk', na, h, w2))
        return h.mean(1) @ fc_w + fc_b[None, :]

    assert out.shape == (B, C)
    assert jnp.allclose(out, ref_mirror(x, adj), atol=1e-2, rtol=1e-2)
    assert jnp.allclose(out, ref_f32(x, adj), atol=1e-1, rtol=1e-1)
    print("KERNEL_OK")
</pallas_src>

<mosaic_0001>
module attributes {stable_mosaic.version = 11 : i64} {
  func.func @_gcn_kernel(%arg0: i32, %arg1: memref<2x16x128xbf16, #tpu.memory_space<vmem>>, %arg2: memref<2x16x16xbf16, #tpu.memory_space<vmem>>, %arg3: memref<2x16x1xf32, #tpu.memory_space<vmem>>, %arg4: memref<128x128xbf16, #tpu.memory_space<vmem>>, %arg5: memref<128x128xbf16, #tpu.memory_space<vmem>>, %arg6: memref<128x128xbf16, #tpu.memory_space<vmem>>, %arg7: memref<1x128xf32, #tpu.memory_space<vmem>>, %arg8: memref<2x1x128xf32, #tpu.memory_space<vmem>>) attributes {dimension_semantics = [#tpu.dimension_semantics<parallel>], iteration_bounds = array<i64: 1>, scalar_prefetch = 0 : i64, scratch_operands = 0 : i64, tpu.core_type = #tpu.core_type<tc>, window_params = [{transform_indices = @transform_0, window_bounds = array<i64: 2, 16, 128>}, {transform_indices = @transform_1, window_bounds = array<i64: 2, 16, 16>}, {transform_indices = @transform_2, window_bounds = array<i64: 2, 16, 1>}, {pipeline_mode = #tpu.pipeline_mode<synchronous>, transform_indices = @transform_3, window_bounds = array<i64: 128, 128>}, {pipeline_mode = #tpu.pipeline_mode<synchronous>, transform_indices = @transform_4, window_bounds = array<i64: 128, 128>}, {pipeline_mode = #tpu.pipeline_mode<synchronous>, transform_indices = @transform_5, window_bounds = array<i64: 128, 128>}, {pipeline_mode = #tpu.pipeline_mode<synchronous>, transform_indices = @transform_6, window_bounds = array<i64: 1, 128>}, {transform_indices = @transform_7, window_bounds = array<i64: 2, 1, 128>}]} {
    %c0 = arith.constant 0 : index
    %c0_0 = arith.constant 0 : index
    %c0_1 = arith.constant 0 : index
    %0 = vector.load %arg1[%c0, %c0_0, %c0_1] : memref<2x16x128xbf16, #tpu.memory_space<vmem>>, vector<2x16x128xbf16>
    %c0_2 = arith.constant 0 : index
    %c0_3 = arith.constant 0 : index
    %c0_4 = arith.constant 0 : index
    %1 = vector.load %arg2[%c0_2, %c0_3, %c0_4] : memref<2x16x16xbf16, #tpu.memory_space<vmem>>, vector<2x16x16xbf16>
    %c0_5 = arith.constant 0 : index
    %c0_6 = arith.constant 0 : index
    %c0_7 = arith.constant 0 : index
    %2 = vector.load %arg3[%c0_5, %c0_6, %c0_7] : memref<2x16x1xf32, #tpu.memory_space<vmem>>, vector<2x16x1xf32>
    %c0_8 = arith.constant 0 : index
    %c0_9 = arith.constant 0 : index
    %3 = vector.load %arg4[%c0_8, %c0_9] : memref<128x128xbf16, #tpu.memory_space<vmem>>, vector<128x128xbf16>
    %c0_10 = arith.constant 0 : index
    %c0_11 = arith.constant 0 : index
    %4 = vector.load %arg5[%c0_10, %c0_11] : memref<128x128xbf16, #tpu.memory_space<vmem>>, vector<128x128xbf16>
    %c0_12 = arith.constant 0 : index
    %c0_13 = arith.constant 0 : index
    %5 = vector.load %arg6[%c0_12, %c0_13] : memref<128x128xbf16, #tpu.memory_space<vmem>>, vector<128x128xbf16>
    %c0_14 = arith.constant 0 : index
    %c0_15 = arith.constant 0 : index
    %6 = vector.load %arg7[%c0_14, %c0_15] : memref<1x128xf32, #tpu.memory_space<vmem>>, vector<1x128xf32>
    %7 = arith.extf %0 : vector<2x16x128xbf16> to vector<2x16x128xf32>
    %8 = vector.broadcast %2 : vector<2x16x1xf32> to vector<2x16x128xf32>
    %9 = arith.mulf %7, %8 : vector<2x16x128xf32>
    %10 = arith.truncf %9 : vector<2x16x128xf32> to vector<2x16x128xbf16>
    %11 = vector.shape_cast %10 : vector<2x16x128xbf16> to vector<32x128xbf16>
    %cst = arith.constant dense<0.000000e+00> : vector<32x128xf32>
    %12 = tpu.matmul %11, %3, %cst {dimension_numbers = #tpu.dot_dimension_numbers<[1], [0], [0], [1], [0, 0, 1, 1], [], []>} : vector<32x128xbf16>, vector<128x128xbf16>, vector<32x128xf32> -> vector<32x128xf32>
    %13 = vector.shape_cast %12 : vector<32x128xf32> to vector<2x16x128xf32>
    %14 = arith.truncf %13 : vector<2x16x128xf32> to vector<2x16x128xbf16>
    "tpu.trace_start"() <{level = 10 : i32, message = "bnm,bmh->bnh"}> : () -> ()
    %cst_16 = arith.constant dense<0.000000e+00> : vector<2x16x128xf32>
    %15 = tpu.matmul %1, %14, %cst_16 {dimension_numbers = #tpu.dot_dimension_numbers<[2], [1], [1], [2], [0, 0, 0, 1, 1, 2], [0], [0]>} : vector<2x16x16xbf16>, vector<2x16x128xbf16>, vector<2x16x128xf32> -> vector<2x16x128xf32>
    "tpu.trace_stop"() : () -> ()
    %16 = vector.broadcast %2 : vector<2x16x1xf32> to vector<2x16x128xf32>
    %17 = arith.mulf %15, %16 : vector<2x16x128xf32>
    %cst_17 = arith.constant 0.000000e+00 : f32
    %18 = vector.broadcast %cst_17 : f32 to vector<2x16x128xf32>
    %19 = arith.maximumf %17, %18 : vector<2x16x128xf32>
    %20 = vector.broadcast %2 : vector<2x16x1xf32> to vector<2x16x128xf32>
    %21 = arith.mulf %19, %20 : vector<2x16x128xf32>
    %22 = arith.truncf %21 : vector<2x16x128xf32> to vector<2x16x128xbf16>
    %23 = vector.shape_cast %22 : vector<2x16x128xbf16> to vector<32x128xbf16>
    %cst_18 = arith.constant dense<0.000000e+00> : vector<32x128xf32>
    %24 = tpu.matmul %23, %4, %cst_18 {dimension_numbers = #tpu.dot_dimension_numbers<[1], [0], [0], [1], [0, 0, 1, 1], [], []>} : vector<32x128xbf16>, vector<128x128xbf16>, vector<32x128xf32> -> vector<32x128xf32>
    %25 = vector.shape_cast %24 : vector<32x128xf32> to vector<2x16x128xf32>
    %26 = arith.truncf %25 : vector<2x16x128xf32> to vector<2x16x128xbf16>
    "tpu.trace_start"() <{level = 10 : i32, message = "bnm,bmh->bnh"}> : () -> ()
    %cst_19 = arith.constant dense<0.000000e+00> : vector<2x16x128xf32>
    %27 = tpu.matmul %1, %26, %cst_19 {dimension_numbers = #tpu.dot_dimension_numbers<[2], [1], [1], [2], [0, 0, 0, 1, 1, 2], [0], [0]>} : vector<2x16x16xbf16>, vector<2x16x128xbf16>, vector<2x16x128xf32> -> vector<2x16x128xf32>
    "tpu.trace_stop"() : () -> ()
    %28 = vector.broadcast %2 : vector<2x16x1xf32> to vector<2x16x128xf32>
    %29 = arith.mulf %27, %28 : vector<2x16x128xf32>
    %cst_20 = arith.constant 0.000000e+00 : f32
    %30 = vector.broadcast %cst_20 : f32 to vector<2x16x128xf32>
    %31 = arith.maximumf %29, %30 : vector<2x16x128xf32>
    %cst_21 = arith.constant 1.000000e+00 : bf16
    %32 = vector.broadcast %cst_21 : bf16 to vector<2x1x16xbf16>
    %33 = arith.truncf %31 : vector<2x16x128xf32> to vector<2x16x128xbf16>
    "tpu.trace_start"() <{level = 10 : i32, message = "bon,bnh->boh"}> : () -> ()
    %cst_22 = arith.constant dense<0.000000e+00> : vector<2x1x128xf32>
    %34 = tpu.matmul %32, %33, %cst_22 {dimension_numbers = #tpu.dot_dimension_numbers<[2], [1], [1], [2], [0, 0, 0, 1, 1, 2], [0], [0]>} : vector<2x1x16xbf16>, vector<2x16x128xbf16>, vector<2x1x128xf32> -> vector<2x1x128xf32>
    "tpu.trace_stop"() : () -> ()
    %cst_23 = arith.constant 1.250000e-01 : f32
    %35 = vector.broadcast %cst_23 : f32 to vector<2x1x128xf32>
    %36 = arith.mulf %34, %35 : vector<2x1x128xf32>
    %37 = arith.truncf %36 : vector<2x1x128xf32> to vector<2x1x128xbf16>
    "tpu.trace_start"() <{level = 10 : i32, message = "boh,hc->boc"}> : () -> ()
    %cst_24 = arith.constant dense<0.000000e+00> : vector<2x1x128xf32>
    %38 = tpu.matmul %37, %5, %cst_24 {dimension_numbers = #tpu.dot_dimension_numbers<[2], [0], [0, 1], [1], [0, 0, 0, 1, 1, 1], [], []>} : vector<2x1x128xbf16>, vector<128x128xbf16>, vector<2x1x128xf32> -> vector<2x1x128xf32>
    "tpu.trace_stop"() : () -> ()
    %39 = vector.shape_cast %6 : vector<1x128xf32> to vector<1x1x128xf32>
    %40 = vector.broadcast %39 : vector<1x1x128xf32> to vector<2x1x128xf32>
    %41 = arith.addf %38, %40 : vector<2x1x128xf32>
    %c0_25 = arith.constant 0 : index
    %c0_26 = arith.constant 0 : index
    %c0_27 = arith.constant 0 : index
    %42 = vector.load %arg8[%c0_25, %c0_26, %c0_27] : memref<2x1x128xf32, #tpu.memory_space<vmem>>, vector<2x1x128xf32>
    tpu.vector_store %arg8[%c0_25, %c0_26, %c0_27], %41 {strides = array<i32>} : memref<2x1x128xf32, #tpu.memory_space<vmem>>, vector<2x1x128xf32>,
    return
  }
  func.func @transform_0(%arg0: i32) -> (i32, i32, i32) {
    %c0_i32 = arith.constant 0 : i32
    %c0_i32_0 = arith.constant 0 : i32
    %c0_i32_1 = arith.constant 0 : i32
    return %arg0, %c0_i32, %c0_i32_0 : i32, i32, i32
  }
  func.func @transform_1(%arg0: i32) -> (i32, i32, i32) {
    %c0_i32 = arith.constant 0 : i32
    %c0_i32_0 = arith.constant 0 : i32
    %c0_i32_1 = arith.constant 0 : i32
    return %arg0, %c0_i32, %c0_i32_0 : i32, i32, i32
  }
  func.func @transform_2(%arg0: i32) -> (i32, i32, i32) {
    %c0_i32 = arith.constant 0 : i32
    %c0_i32_0 = arith.constant 0 : i32
    %c0_i32_1 = arith.constant 0 : i32
    return %arg0, %c0_i32, %c0_i32_0 : i32, i32, i32
  }
  func.func @transform_3(%arg0: i32) -> (i32, i32) {
    %c0_i32 = arith.constant 0 : i32
    %c0_i32_0 = arith.constant 0 : i32
    %c0_i32_1 = arith.constant 0 : i32
    return %c0_i32, %c0_i32_0 : i32, i32
  }
  func.func @transform_4(%arg0: i32) -> (i32, i32) {
    %c0_i32 = arith.constant 0 : i32
    %c0_i32_0 = arith.constant 0 : i32
    %c0_i32_1 = arith.constant 0 : i32
    return %c0_i32, %c0_i32_0 : i32, i32
  }
  func.func @transform_5(%arg0: i32) -> (i32, i32) {
    %c0_i32 = arith.constant 0 : i32
    %c0_i32_0 = arith.constant 0 : i32
    %c0_i32_1 = arith.constant 0 : i32
    return %c0_i32, %c0_i32_0 : i32, i32
  }
  func.func @transform_6(%arg0: i32) -> (i32, i32) {
    %c0_i32 = arith.constant 0 : i32
    %c0_i32_0 = arith.constant 0 : i32
    %c0_i32_1 = arith.constant 0 : i32
    return %c0_i32, %c0_i32_0 : i32, i32
  }
  func.func @transform_7(%arg0: i32) -> (i32, i32, i32) {
    %c0_i32 = arith.constant 0 : i32
    %c0_i32_0 = arith.constant 0 : i32
    %c0_i32_1 = arith.constant 0 : i32
    return %arg0, %c0_i32, %c0_i32_0 : i32, i32, i32
  }
}

</mosaic_0001>

<bundles_post_ra>
// kernel: tpu_custom_call.1
= control target key start
LH: loop header
LB: loop body
LE: loop exit
PB: predicated region body
PF: predicated region fallthrough
CT: control target
= control target key end

     0   :  { %12 = vsyncpa [#allocation3], 0  ;;  %s1328_s0 = inlined_call_operand.vmem [shape: bf16[2,16,128], index: 0, kind: input, shape index: {}]   ;;  %s1329_s1 = inlined_call_operand.vmem [shape: bf16[2,16,16], index: 1, kind: input, shape index: {}]   ;;  %s1330_s2 = inlined_call_operand.vmem [shape: f32[2,16,1], index: 2, kind: input, shape index: {}]   ;;  %s1331_s3 = inlined_call_operand.hbm [shape: bf16[128,128], index: 3, kind: input, shape index: {}]   ;;  %s1332_s4 = inlined_call_operand.hbm [shape: bf16[128,128], index: 4, kind: input, shape index: {}]   ;;  %s1333_s5 = inlined_call_operand.hbm [shape: bf16[128,128], index: 5, kind: input, shape index: {}]   ;;  %s1334_s6 = inlined_call_operand.vmem [shape: f32[1,128], index: 6, kind: input, shape index: {}]   ;;  %s1335_s7 = inlined_call_operand.hbm [shape: f32[2,1,128], index: 7, kind: output, shape index: {}]  }
   0x1   :  { %13 = vsyncpa [#allocation6], 0 }
   0x2   :  { %14 = vsyncpa [#allocation4], 0  ;;  %s1126_s24 = smov [#allocation5]   ;;  %s1127_s26 = smov [#allocation2]  }
   0x3   :  { %s38_s25 = sshll.u32 %s1126_s24, 4  ;;  %s26_s27 = sshll.u32 %s1127_s26, 4  ;;  %s39_s25 = int_to_ptr.vmem [resolvable:$true] %s38_s25  ;;  %s1179_s27 = int_to_ptr.vmem [resolvable:$true] %s26_s27 }
   0x4   :  { %s1032_s30 = scalar_lea.hbm %s1332_s4, 1024 }
   0x5   :  { %p1033_p0 = scmp.ne.s32.totalorder %s1332_s4, %s1032_s30  ;;  %p1036_p1 = scmp.lt.u32.totalorder %s1032_s30, %s1332_s4 }
   0x7   :  { %p1038_p2 = pnand %p1036_p1, %p1033_p0 }
   0x9   :  { %1041 = shalt.err (!%p1038_p2)
}
   0xa   :  { %s1042_s12 = scalar_lea.vmem %s39_s25, 1024  ;;  %p1047_p4 = scmp.lt.s32.totalorder %s39_s25, %s39_s25 }
   0xb   :  { %p1043_p3 = scmp.ne.s32.totalorder %s39_s25, %s1042_s12  ;;  %p1048_p5 = scmp.lt.s32.totalorder %s1042_s12, %s1042_s12 }
   0xd   :  { %p1049_p6 = por %p1048_p5, %p1047_p4 }
   0xf   :  { %p1050_p7 = pnand %p1049_p6, %p1043_p3 }
  0x11   :  { %1053 = shalt.err (!%p1050_p7)
}
  0x12   :  { %s1128_s13 = smov 64   ;;  %s1129_s14 = smov 4  }
  0x13   :  { %44 = dma.hbm_to_vmem [thread:$0]  %s1332_s4, 1024, %s39_s25, [#allocation6], %s1128_s13, %s1128_s13, %s1129_s14  }
  0x14   :  { %s1054_s19 = scalar_lea.hbm %s1331_s3, 1024 }
  0x15   :  { %p1055_p8 = scmp.ne.s32.totalorder %s1331_s3, %s1054_s19  ;;  %p1058_p9 = scmp.lt.u32.totalorder %s1054_s19, %s1331_s3 }
  0x17   :  { %p1060_p10 = pnand %p1058_p9, %p1055_p8 }
  0x19   :  { %1063 = shalt.err (!%p1060_p10)
}
  0x1a   :  { %s1064_s24 = scalar_lea.vmem %s1179_s27, 1024  ;;  %p1069_p12 = scmp.lt.s32.totalorder %s1179_s27, %s1179_s27 }
  0x1b   :  { %p1065_p11 = scmp.ne.s32.totalorder %s1179_s27, %s1064_s24  ;;  %p1070_p13 = scmp.lt.s32.totalorder %s1064_s24, %s1064_s24 }
  0x1d   :  { %p1071_p0 = por %p1070_p13, %p1069_p12 }
  0x1f   :  { %p1072_p1 = pnand %p1071_p0, %p1065_p11 }
  0x21   :  { %1075 = shalt.err (!%p1072_p1)
}
  0x22   :  { %32 = dma.hbm_to_vmem [thread:$0]  %s1331_s3, 1024, %s1179_s27, [#allocation3], %s1128_s13, %s1128_s13, %s1129_s14  }
  0x23   :  { %s1130_s26 = smov [#allocation7]   ;;  %s1076_s8 = scalar_lea.hbm %s1333_s5, 1024 }
  0x24   :  { %s50_s28 = sshll.u32 %s1130_s26, 4  ;;  %p1077_p2 = scmp.ne.s32.totalorder %s1333_s5, %s1076_s8  ;;  %s51_s28 = int_to_ptr.vmem [resolvable:$true] %s50_s28 }
  0x25   :  { %p1080_p3 = scmp.lt.u32.totalorder %s1076_s8, %s1333_s5 }
  0x27   :  { %p1082_p4 = pnand %p1080_p3, %p1077_p2 }
  0x29   :  { %1085 = shalt.err (!%p1082_p4)
}
  0x2a   :  { %s1086_s15 = scalar_lea.vmem %s51_s28, 1024  ;;  %p1091_p6 = scmp.lt.s32.totalorder %s51_s28, %s51_s28 }
  0x2b   :  { %p1087_p5 = scmp.ne.s32.totalorder %s51_s28, %s1086_s15  ;;  %p1092_p7 = scmp.lt.s32.totalorder %s1086_s15, %s1086_s15 }
  0x2d   :  { %p1093_p8 = por %p1092_p7, %p1091_p6 }
  0x2f   :  { %p1094_p9 = pnand %p1093_p8, %p1087_p5 }
  0x31   :  { %1097 = shalt.err (!%p1094_p9)
}
  0x32   :  { %56 = dma.hbm_to_vmem [thread:$0]  %s1333_s5, 1024, %s51_s28, [#allocation6], %s1128_s13, %s1128_s13, %s1129_s14  }
  0x33   :  { %1120 = dma.done.wait [#allocation3], 1024  }
  0x34   :  { %1121 = vsyncadd [#allocation3], 4294966272 }
  0x35   :  { %1122 = dma.done.wait [#allocation6], 2048  }
  0x36   :  { %1123 = vsyncadd [#allocation6], 4294965248  ;;  %v1131_v0 = vmov 0   ;;  %v80_v1 = vld [vmem:[%s1330_s2 + $0x10] sm:$0xff]  ;;  %v78_v2 = vld [vmem:[%s1330_s2] sm:$0xff]  ;;  %v1132_v29 = vmov 0.0  }
  0x37   :  { %1004 = vset.pattern.permute.xlu1 %v1131_v0  ;;  %1003 = vset.pattern.permute.xlu0 %v1131_v0  ;;  %v81_v3 = vld [vmem:[%s1330_s2 + $0x18] sm:$0xff]  ;;  %v79_v4 = vld [vmem:[%s1330_s2 + $0x8] sm:$0xff]  ;;  %v1005_v5 = vld [vmem:[#allocation2] sm:$0xff]   ;;  %vm1133_vm0 = vmmov 0   ;;  %vm265_vm1 = vcmask 130048   ;;  %vm656_vm2 = vcmask 1041409  }
  0x38   :  { %147 = vperm.xlu1 %1004, %v80_v1   ;;  %137 = vperm.xlu0 %1003, %v78_v2   ;;  %v1006_v6 = vld [vmem:[#allocation2 + $0x8] sm:$0xff]   ;;  %v1007_v7 = vld [vmem:[#allocation2 + $0x10] sm:$0xff]   ;;  %v1008_v8 = vld [vmem:[#allocation2 + $0x18] sm:$0xff]   ;;  %s1136_s28 = smov [#allocation8]  }
  0x39   :  { %894 = vmatprep.subr.bf16.mxu0 %v1005_v5  ;;  %v1009_v9 = vld [vmem:[#allocation2 + $0x20] sm:$0xff]   ;;  %v1010_v10 = vld [vmem:[#allocation2 + $0x28] sm:$0xff]   ;;  %v1011_v11 = vld [vmem:[#allocation2 + $0x30] sm:$0xff]   ;;  %s797_s29 = sshll.u32 %s1136_s28, 4  ;;  %s798_s29 = int_to_ptr.vmem [resolvable:$true] %s797_s29 }
  0x3a   :  { %895 = vmatpush3.bf16.msra.mxu0 %v1005_v5  ;;  %v1012_v12 = vld [vmem:[#allocation2 + $0x38] sm:$0xff]   ;;  %v852_v13 = vld [vmem:[%s1328_s0 + $0x8] sm:$0xff]   ;;  %v845_v14 = vld [vmem:[%s1328_s0] sm:$0xff]   ;;  %s1098_s30 = scalar_lea.vmem %s798_s29, 32  ;;  %p1103_p11 = scmp.lt.s32.totalorder %s798_s29, %s798_s29 }
  0x3b   :  { %896 = vmatprep.subr.bf16.mxu0 %v1006_v6  ;;  %v850_v17 = vunpack.c.l.bf16 %v852_v13  ;;  %v851_v18 = vunpack.c.h.bf16 %v852_v13  ;;  %v846_v19 = vunpack.c.l.bf16 %v845_v14  ;;  %v847_v20 = vunpack.c.h.bf16 %v845_v14  ;;  %v1015_v30 = vld [vmem:[#allocation5] sm:$0xff]   ;;  %v1016_v31 = vld [vmem:[#allocation5 + $0x8] sm:$0xff]   ;;  %v1017_v32 = vld [vmem:[#allocation5 + $0x10] sm:$0xff]   ;;  %p1099_p10 = scmp.ne.s32.totalorder %s798_s29, %s1098_s30  ;;  %p1104_p12 = scmp.lt.s32.totalorder %s1098_s30, %s1098_s30 }
  0x3c   :  { %152 = vperm.xlu1 %1004, %v81_v3   ;;  %142 = vperm.xlu0 %1003, %v79_v4   ;;  %v1018_v33 = vld [vmem:[#allocation5 + $0x18] sm:$0xff]   ;;  %v1013_v40 = vld [vmem:[%s1329_s1] sm:$0xff]   ;;  %v1014_v41 = vld [vmem:[%s1329_s1 + $0x8] sm:$0xff]  }
  0x3d   :  { %926 = vmatprep.subr.bf16.mxu1 %v1015_v30  ;;  %v1019_v42 = vld [vmem:[#allocation5 + $0x20] sm:$0xff]   ;;  %v1020_v43 = vld [vmem:[#allocation5 + $0x28] sm:$0xff]   ;;  %v1021_v44 = vld [vmem:[#allocation5 + $0x30] sm:$0xff]   ;;  %p1105_p13 = por %p1104_p12, %p1103_p11 }
  0x3e   :  { %897 = vmatpush3.bf16.msra.mxu0 %v1006_v6  ;;  %927 = vmatpush3.bf16.msra.mxu1 %v1015_v30  ;;  %v1022_v45 = vld [vmem:[#allocation5 + $0x38] sm:$0xff]   ;;  %v1134_v30 = vmov 1065369472  }
  0x3f   :  { %898 = vmatprep.subr.bf16.mxu0 %v1007_v7  ;;  %928 = vmatprep.subr.bf16.mxu1 %v1016_v31  ;;  %p1106_p0 = pnand %p1105_p13, %p1099_p10 }
  0x42   :  { %899 = vmatpush3.bf16.msra.mxu0 %v1007_v7  ;;  %929 = vmatpush3.bf16.msra.mxu1 %v1016_v31 }
  0x43   :  { %900 = vmatprep.subr.bf16.mxu0 %v1008_v8  ;;  %930 = vmatprep.subr.bf16.mxu1 %v1017_v32 }
  0x46   :  { %901 = vmatpush3.bf16.msra.mxu0 %v1008_v8  ;;  %931 = vmatpush3.bf16.msra.mxu1 %v1017_v32  ;;  %v1024_v32 = vld [vmem:[#allocation7 + $0x8] sm:$0xff]  }
  0x47   :  { %902 = vmatprep.subr.bf16.mxu0 %v1009_v9  ;;  %932 = vmatprep.subr.bf16.mxu1 %v1018_v33 }
  0x4a   :  { %903 = vmatpush3.bf16.msra.mxu0 %v1009_v9  ;;  %933 = vmatpush3.bf16.msra.mxu1 %v1018_v33  ;;  %v1025_v33 = vld [vmem:[#allocation7 + $0x10] sm:$0xff]  }
  0x4b   :  { %904 = vmatprep.subr.bf16.mxu0 %v1010_v10  ;;  %934 = vmatprep.subr.bf16.mxu1 %v1019_v42 }
  0x4e   :  { %905 = vmatpush3.bf16.msra.mxu0 %v1010_v10  ;;  %935 = vmatpush3.bf16.msra.mxu1 %v1019_v42 }
  0x4f   :  { %906 = vmatprep.subr.bf16.mxu0 %v1011_v11  ;;  %936 = vmatprep.subr.bf16.mxu1 %v1020_v43 }
  0x52   :  { %907 = vmatpush3.bf16.msra.mxu0 %v1011_v11  ;;  %937 = vmatpush3.bf16.msra.mxu1 %v1020_v43 }
  0x53   :  { %908 = vmatprep.subr.bf16.mxu0 %v1012_v12  ;;  %938 = vmatprep.subr.bf16.mxu1 %v1021_v44 }
  0x56   :  { %909 = vmatpush3.bf16.msra.mxu0 %v1012_v12  ;;  %939 = vmatpush3.bf16.msra.mxu1 %v1021_v44 }
  0x57   :  { %914 = vmatprep.subr.bf16.mxu0 %v1132_v29  ;;  %940 = vmatprep.subr.bf16.mxu1 %v1022_v45 }
  0x5a   :  { %941 = vmatpush3.bf16.msra.mxu1 %v1022_v45 }
  0x5b   :  { %958 = vmatprep.subr.bf16.mxu1 %v1132_v29 }
  0xb7   :  { %v1249_v15 = vpop.permute.xlu1 %147  ;;  %v1251_v16 = vpop.permute.xlu0 %137 }
  0xb8   :  { %v157_v23 = vmul.f32 %v850_v17, %v1249_v15  ;;  %v155_v25 = vmul.f32 %v846_v19, %v1251_v16 }
  0xbb   :  { %v1253_v21 = vpop.permute.xlu1 %152  ;;  %v1255_v22 = vpop.permute.xlu0 %142 }
  0xbc   :  { %v158_v24 = vmul.f32 %v851_v18, %v1253_v21  ;;  %v156_v26 = vmul.f32 %v847_v20, %v1255_v22 }
  0xbe   :  { %v159_v27 = vpack.c.bf16 %v156_v26, %v155_v25  ;;  %v160_v28 = vpack.c.bf16 %v158_v24, %v157_v23  ;;  %v1023_v26 = vld [vmem:[#allocation7] sm:$0xff]  }
  0xc0   :  { %910 = vmatprep.mubr.bf16.mxu0 %v159_v27 }
  0xc1   :  { %911 = vmatmul.mubr.bf16.vlgmr.msra.gmra.mrb[0].mxu0 %v160_v28 }
  0xc2   :  { %916 = vmatprep.mubr.msk.bf16.mxu0 %vm1133_vm0, %v1132_v29 }
 0x194   :  { %v912_v34 = vpop.f32.mrb[0].mxu0 }
 0x195   :  { %v243_v35 = vpop.f32.mrb[1].mxu0 }
 0x196   :  { %v913_v36 = vpop.f32.mrb[2].mxu0 }
 0x197   :  { %v259_v37 = vpack.c.bf16 %v913_v36, %v912_v34  ;;  %v246_v38 = vpop.f32.mrb[3].mxu0  ;;  %v1027_v34 = vld [vmem:[#allocation7 + $0x20] sm:$0xff]   ;;  %v1029_v36 = vld [vmem:[#allocation7 + $0x30] sm:$0xff]  }
 0x198   :  { %v258_v39 = vpack.c.bf16 %v246_v38, %v243_v35  ;;  %v1028_v35 = vld [vmem:[#allocation7 + $0x28] sm:$0xff]  }
 0x19a   :  { %915 = vmatpush3.bf16.msra.mxu0 %v258_v39 }
 0x19b   :  { %920 = vmatprep.subr.bf16.mxu0 %v1132_v29 }
 0x19d   :  { %917 = vmatmul.mubr.msk.bf16.vlgmr.msra.gmra.mrb[4].mxu0 %vm265_vm1, %v1013_v40 }
 0x19e   :  { %921 = vmatpush3.bf16.msra.mxu0 %v259_v37  ;;  %922 = vmatprep.mubr.msk.bf16.mxu0 %vm1133_vm0, %v1132_v29  ;;  %v1030_v37 = vld [vmem:[#allocation7 + $0x38] sm:$0xff]  }
 0x19f   :  { %946 = vmatprep.subr.bf16.mxu0 %v1132_v29 }
 0x1a5   :  { %923 = vmatmul.mubr.msk.bf16.vlgmr.msra.gmra.mrb[8].mxu0 %vm265_vm1, %v1014_v41 }
 0x1a6   :  { %948 = vmatprep.mubr.msk.bf16.mxu0 %vm1133_vm0, %v1132_v29 }
 0x270   :  { %v303_v46 = vpop.f32.mrb[4].mxu0 }
 0x271   :  { %v359_v47 = vmul.f32 %v303_v46, %v1251_v16  ;;  %v918_v48 = vpop.f32.mrb[5].mxu0 }
 0x272   :  { %v306_v49 = vpop.f32.mrb[6].mxu0 }
 0x273   :  { %v363_v50 = vmax.f32 %v359_v47, 0.0  ;;  %v360_v51 = vmul.f32 %v306_v49, %v1255_v22  ;;  %v919_v52 = vpop.f32.mrb[7].mxu0 }
 0x275   :  { %v364_v53 = vmax.f32 %v360_v51, 0.0  ;;  %v367_v54 = vmul.f32 %v363_v50, %v1251_v16 }
 0x277   :  { %v368_v55 = vmul.f32 %v364_v53, %v1255_v22 }
 0x278   :  { %v352_v56 = vpop.f32.mrb[8].mxu0 }
 0x279   :  { %v361_v57 = vmul.f32 %v352_v56, %v1249_v15  ;;  %v924_v58 = vpop.f32.mrb[9].mxu0  ;;  %v371_v59 = vpack.c.bf16 %v368_v55, %v367_v54  ;;  %v1135_v54 = vmov 1966171168   ;;  %v713_v56 = vlaneseq }
 0x27a   :  { %v355_v60 = vpop.f32.mrb[10].mxu0  ;;  %v711_v55 = vunpack.c.l.s4 %v1135_v54 }
 0x27b   :  { %v365_v61 = vmax.f32 %v361_v57, 0.0  ;;  %v362_v62 = vmul.f32 %v355_v60, %v1253_v21  ;;  %v925_v63 = vpop.f32.mrb[11].mxu0  ;;  %942 = vmatprep.mubr.bf16.mxu1 %v371_v59  ;;  %v714_v58 = vshrl.u32 %v713_v56, 7  ;;  %v1031_v59 = vld [vmem:[%s1334_s6] ss:$0 sps:$4 sm:$0x11]  }
 0x27c   :  { %v712_v57 = vunpack.c.0.s8 %v711_v55 }
 0x27d   :  { %v366_v0 = vmax.f32 %v362_v62, 0.0  ;;  %v369_v1 = vmul.f32 %v365_v61, %v1249_v15 }
 0x27e   :  { %v715_v60 = vsub.s32 %v712_v57, %v714_v58 }
 0x27f   :  { %v370_v2 = vmul.f32 %v366_v0, %v1253_v21 }
 0x280   :  { %v716_v61 = vrot.slane %v1031_v59, %v715_v60 }
 0x281   :  { %v372_v3 = vpack.c.bf16 %v370_v2, %v369_v1 }
 0x282   :  { %v723_v62 = vrot.slane %v716_v61, %v715_v60 }
 0x283   :  { %943 = vmatmul.mubr.bf16.vlgmr.msra.gmra.mrb[0].mxu1 %v372_v3 }
 0x284   :  { %960 = vmatprep.mubr.msk.bf16.mxu1 %vm1133_vm0, %v1132_v29 }
 0x356   :  { %v944_v4 = vpop.f32.mrb[0].mxu1 }
 0x357   :  { %v455_v5 = vpop.f32.mrb[1].mxu1 }
 0x358   :  { %v945_v6 = vpop.f32.mrb[2].mxu1 }
 0x359   :  { %v471_v7 = vpack.c.bf16 %v945_v6, %v944_v4  ;;  %v458_v8 = vpop.f32.mrb[3].mxu1 }
 0x35a   :  { %v470_v9 = vpack.c.bf16 %v458_v8, %v455_v5 }
 0x35c   :  { %947 = vmatpush3.bf16.msra.mxu0 %v470_v9 }
 0x35d   :  { %952 = vmatprep.subr.bf16.mxu0 %v1132_v29 }
 0x35f   :  { %949 = vmatmul.mubr.msk.bf16.vlgmr.msra.gmra.mrb[12].mxu0 %vm265_vm1, %v1013_v40 }
 0x360   :  { %953 = vmatpush3.bf16.msra.mxu0 %v471_v7  ;;  %954 = vmatprep.mubr.msk.bf16.mxu0 %vm1133_vm0, %v1132_v29 }
 0x361   :  { %964 = vmatprep.subr.bf16.mxu0 %v1132_v29 }
 0x367   :  { %955 = vmatmul.mubr.msk.bf16.vlgmr.msra.gmra.mrb[16].mxu0 %vm265_vm1, %v1014_v41 }
 0x368   :  { %966 = vmatprep.mubr.msk.bf16.mxu0 %vm1133_vm0, %v1132_v29 }
 0x432   :  { %v506_v10 = vpop.f32.mrb[12].mxu0 }
 0x433   :  { %v554_v11 = vmul.f32 %v506_v10, %v1251_v16  ;;  %v950_v12 = vpop.f32.mrb[13].mxu0 }
 0x434   :  { %v509_v13 = vpop.f32.mrb[14].mxu0 }
 0x435   :  { %v555_v14 = vmul.f32 %v509_v13, %v1255_v22  ;;  %v951_v17 = vpop.f32.mrb[15].mxu0  ;;  %v558_v18 = vmax.f32 %v554_v11, 0.0 }
 0x437   :  { %v559_v19 = vmax.f32 %v555_v14, 0.0 }
 0x439   :  { %v562_v20 = vpack.c.bf16 %v559_v19, %v558_v18 }
 0x43a   :  { %v547_v23 = vpop.f32.mrb[16].mxu0 }
 0x43b   :  { %v556_v24 = vmul.f32 %v547_v23, %v1249_v15  ;;  %v956_v25 = vpop.f32.mrb[17].mxu0  ;;  %959 = vmatpush3.bf16.msra.mxu1 %v562_v20 }
 0x43c   :  { %v550_v27 = vpop.f32.mrb[18].mxu0  ;;  %970 = vmatprep.subr.bf16.mxu1 %v1132_v29 }
 0x43d   :  { %v557_v28 = vmul.f32 %v550_v27, %v1253_v21  ;;  %v957_v16 = vpop.f32.mrb[19].mxu0  ;;  %v560_v22 = vmax.f32 %v556_v24, 0.0  ;;  %v1026_v21 = vld [vmem:[#allocation7 + $0x18] sm:$0xff]  }
 0x43e   :  { %961 = vmatmul.mubr.msk.bf16.vlgmr.msra.gmra.mrb[4].mxu1 %vm265_vm1, %v1134_v30 }
 0x43f   :  { %v561_v31 = vmax.f32 %v557_v28, 0.0  ;;  %971 = vmatpush3.bf16.msra.mxu1 %v1023_v26  ;;  %986 = vmatprep.mubr.msk.bf16.mxu1 %vm1133_vm0, %v1132_v29 }
 0x440   :  { %972 = vmatprep.subr.bf16.mxu1 %v1132_v29 }
 0x441   :  { %v563_v15 = vpack.c.bf16 %v561_v31, %v560_v22 }
 0x443   :  { %965 = vmatpush3.bf16.msra.mxu0 %v563_v15  ;;  %973 = vmatpush3.bf16.msra.mxu1 %v1024_v32 }
 0x444   :  { %974 = vmatprep.subr.bf16.mxu1 %v1132_v29 }
 0x446   :  { %967 = vmatmul.mubr.msk.bf16.vlgmr.msra.gmra.mrb[20].mxu0 %vm265_vm1, %v1134_v30 }
 0x447   :  { %975 = vmatpush3.bf16.msra.mxu1 %v1025_v33 }
 0x448   :  { %976 = vmatprep.subr.bf16.mxu1 %v1132_v29 }
 0x44b   :  { %977 = vmatpush3.bf16.msra.mxu1 %v1026_v21 }
 0x44c   :  { %978 = vmatprep.subr.bf16.mxu1 %v1132_v29 }
 0x44f   :  { %979 = vmatpush3.bf16.msra.mxu1 %v1027_v34 }
 0x450   :  { %980 = vmatprep.subr.bf16.mxu1 %v1132_v29 }
 0x453   :  { %981 = vmatpush3.bf16.msra.mxu1 %v1028_v35 }
 0x454   :  { %982 = vmatprep.subr.bf16.mxu1 %v1132_v29 }
 0x457   :  { %983 = vmatpush3.bf16.msra.mxu1 %v1029_v36 }
 0x458   :  { %984 = vmatprep.subr.bf16.mxu1 %v1132_v29 }
 0x45b   :  { %985 = vmatpush3.bf16.msra.mxu1 %v1030_v37 }
 0x511   :  { %v601_v38 = vpop.f32.mrb[4].mxu1 }
 0x512   :  { %v962_v39 = vpop.f32.mrb[5].mxu1  ;;  %v647_v42 = vmul.f32 0.125, %v601_v38 }
 0x513   :  { %v604_v40 = vpop.f32.mrb[6].mxu1 }
 0x514   :  { %v963_v41 = vpop.f32.mrb[7].mxu1  ;;  %v649_v46 = vpack.c.bf16 %v647_v42, %v647_v42 }
 0x516   :  { %v653_v51 = vunpack.c.l.b16 %v649_v46 }
 0x519   :  { %v641_v43 = vpop.f32.mrb[20].mxu0 }
 0x51a   :  { %v648_v44 = vmul.f32 0.125, %v641_v43  ;;  %v968_v45 = vpop.f32.mrb[21].mxu0 }
 0x51b   :  { %v644_v47 = vpop.f32.mrb[22].mxu0 }
 0x51c   :  { %v650_v48 = vpack.c.bf16 %v648_v44, %v648_v44  ;;  %v969_v49 = vpop.f32.mrb[23].mxu0 }
 0x51e   :  { %v654_v50 = vunpack.c.l.b16 %v650_v48 }
 0x520   :  { %v655_v52 = vrot.slane %v654_v50, 7 }
 0x522   :  { %v657_v53 = vsel %vm656_vm2, %v655_v52, %v653_v51 }
 0x523   :  { %v658_v29 = vpack.c.b16 %v657_v53, %v657_v53 }
 0x525   :  { %987 = vmatmul.mubr.bf16.vlgmr.msra.gmra.mrb[8].mxu1 %v658_v29 }
 0x5f8   :  { %v759_v63 = vpop.f32.mrb[8].mxu1 }
 0x5f9   :  { %v760_v0 = vadd.f32 %v759_v63, %v723_v62  ;;  %v988_v1 = vpop.f32.mrb[9].mxu1 }
 0x5fa   :  { %v762_v2 = vpop.f32.mrb[10].mxu1 }
 0x5fb   :  { %v772_v3 = vrot.slane %v760_v0, %v715_v60  ;;  %v989_v4 = vpop.f32.mrb[11].mxu1 }
 0x5fd   :  { %v773_v5 = vcombine.high %v772_v3, %v772_v3  ;;  %842 = vst.sshfl [vmem:[#allocation8] sm:$0x1 pattern:$0x73625140] %v772_v3 }
 0x5ff   :  { %843 = vst.sshfl [vmem:[#allocation8 + $0x1] sm:$0x1 pattern:$0x73625140] %v773_v5 }
 0x600   :  { %1109 = shalt.err (!%p1106_p0)
}
 0x601   :  { %s1110_s9 = scalar_lea.hbm %s1335_s7, 32 }
 0x602   :  { %p1111_p1 = scmp.ne.s32.totalorder %s1335_s7, %s1110_s9  ;;  %p1114_p2 = scmp.lt.u32.totalorder %s1110_s9, %s1335_s7 }
 0x604   :  { %p1116_p3 = pnand %p1114_p2, %p1111_p1 }
 0x606   :  { %1119 = shalt.err (!%p1116_p3)
}
 0x607   :  { %s1137_s3 = smov 16   ;;  %s1138_s27 = smov 1  }
 0x608   :  { %803 = dma.vmem_to_hbm [thread:$0]  %s798_s29, 32, %s1335_s7, [#allocation4], %s1137_s3, %s1137_s3, %s1138_s27  }
 0x609   :  { %1124 = dma.done.wait [#allocation4], 32  }
 0x60a   :  { %1125 = vsyncadd [#allocation4], 4294967264 }
 0x60b   :  { %807 = vsyncpa [#allocation3], 1 }
 0x60c   :  { %808 = vsyncpa [#allocation6], 1 }
 0x60d   :  { %809 = vsyncpa [#allocation4], 1 }

</bundles_post_ra>
